<compile_context>
chip_gen: v5e
topology: v5e:2x2
jax: 0.10.0
libtpu: 0.0.40
codegen_flags: <defaults>
</compile_context>

<pallas_src>
import jax
import jax.numpy as jnp
from jax.experimental import pallas as pl
from jax.experimental.pallas import tpu as pltpu


def _ae_kernel(x_ref, we_ref, be_ref, wd_ref, bd_ref, o_ref):
    # x_ref : (TB, D)    batch tile of flattened images (f32 in HBM)
    # we_ref: (D, Hdim)  encoder weight, pre-transposed to (in, out), bf16/f32
    # be_ref: (1, Hdim)  encoder bias (f32)
    # wd_ref: (Hdim, D)  decoder weight, pre-transposed to (in, out), bf16/f32
    # bd_ref: (1, D)     decoder bias (f32)
    # o_ref : (TB, D)    reconstructed output tile (f32)
    cdt = we_ref.dtype  # MXU operand dtype (bf16 by default)
    x = x_ref[...].astype(cdt)

    # encoder: h = x @ We^T + be   (f32 accumulate)
    h = jnp.dot(x, we_ref[...], preferred_element_type=jnp.float32) + be_ref[...]

    # decoder: y = h @ Wd^T + bd
    y = jnp.dot(h.astype(cdt), wd_ref[...], preferred_element_type=jnp.float32)
    y = y + bd_ref[...]

    # sigmoid = 1 / (1 + exp(-y)); exp + approx reciprocal both go to the EUP.
    t = jnp.exp(-y)
    o_ref[...] = pl.reciprocal(1.0 + t, approx=True).astype(o_ref.dtype)


def prepare_params(w_enc, b_enc, w_dec, b_dec, *, use_bf16=True):
    """One-time weight prep (hoisted out of the forward call).

    PyTorch layout in: w_enc (Hdim, D), w_dec (D, Hdim), biases (Hdim,), (D,).
    Returns (we_t, be, wd_t, bd): pre-transposed (in, out) weights in the MXU
    compute dtype and 2-D f32 biases.
    """
    cdt = jnp.bfloat16 if use_bf16 else jnp.float32
    we_t = jnp.asarray(w_enc).T.astype(cdt)            # (D, Hdim)
    wd_t = jnp.asarray(w_dec).T.astype(cdt)            # (Hdim, D)
    be = jnp.asarray(b_enc, jnp.float32).reshape(1, -1)  # (1, Hdim)
    bd = jnp.asarray(b_dec, jnp.float32).reshape(1, -1)  # (1, D)
    return we_t, be, wd_t, bd


def autoencoder_forward(x_nchw, params, *, batch_tile=1024):
    """x_nchw: (B, C, H, W). params: output of prepare_params()."""
    we_t, be, wd_t, bd = params
    B, C, H, W = x_nchw.shape
    D = C * H * W
    Hdim = we_t.shape[1]
    assert we_t.shape == (D, Hdim) and wd_t.shape == (Hdim, D)
    assert be.shape == (1, Hdim) and bd.shape == (1, D)

    act_dtype = x_nchw.dtype
    act_bytes = jnp.dtype(act_dtype).itemsize
    w_bytes = jnp.dtype(we_t.dtype).itemsize

    # --- batch tile selection -----------------------------------------------
    # B < 8: single full-dim block (legal regardless of sublane alignment).
    # Otherwise TB is a multiple of 8; for large B keep TB <= B/2 so the
    # ("parallel",) axis has >= 2 steps to shard across v7x's two TensorCores.
    if B <= 8:
        TB = B
    else:
        tb_cap = max(8, (B // 2) // 8 * 8) if B >= 16 else 8
        TB = min(batch_tile, tb_cap)
    grid = (pl.cdiv(B, TB),)

    x2d = x_nchw.reshape(B, D)  # row-major flatten == torch .view (no copy)

    # --- VMEM budget (double-buffered x/out tiles + resident weights) --------
    pipeline_bytes = 2 * 2 * TB * D * act_bytes                     # x + out, 2 bufs each
    weight_bytes = 2 * (2 * D * Hdim * w_bytes + (Hdim + D) * 4)    # weights + biases, 2 bufs
    interm_bytes = TB * (D + Hdim) * 4 + 2 * TB * D * w_bytes       # f32 y/h + bf16 copies
    vmem_est = pipeline_bytes + weight_bytes + interm_bytes

    compiler_kwargs = {"dimension_semantics": ("parallel",)}
    if vmem_est > 16 * 1024 * 1024:   # v5e scoped default is 16 MiB
        # Cap at 48 MiB: leaves headroom inside v7x's 64 MiB physical VMEM.
        compiler_kwargs["vmem_limit_bytes"] = min(int(vmem_est * 5 // 4),
                                                  48 * 1024 * 1024)

    cost = pl.CostEstimate(
        flops=2 * 2 * B * D * Hdim,                                  # two matmuls
        transcendentals=2 * B * D,                                   # exp + reciprocal
        bytes_accessed=(2 * B * D * act_bytes                        # x in + out
                        + 2 * D * Hdim * w_bytes                     # both weights
                        + (Hdim + D) * 4),                           # biases
    )

    out2d = pl.pallas_call(
        _ae_kernel,
        out_shape=jax.ShapeDtypeStruct((B, D), act_dtype),
        grid=grid,
        in_specs=[
            pl.BlockSpec((TB, D), lambda i: (i, 0)),     # x: walk batch tiles
            pl.BlockSpec((D, Hdim), lambda i: (0, 0)),   # encoder W: VMEM-resident
            pl.BlockSpec((1, Hdim), lambda i: (0, 0)),   # encoder b
            pl.BlockSpec((Hdim, D), lambda i: (0, 0)),   # decoder W: VMEM-resident
            pl.BlockSpec((1, D), lambda i: (0, 0)),      # decoder b
        ],
        out_specs=pl.BlockSpec((TB, D), lambda i: (i, 0)),
        compiler_params=pltpu.CompilerParams(**compiler_kwargs),
        cost_estimate=cost,
    )(x2d, we_t, be, wd_t, bd)

    return out2d.reshape(B, C, H, W)


def init_params(key, layers=(28 * 28, 30)):
    """Deterministic init matching nn.Linear shapes: weight (out, in), bias (out,)."""
    d_in, d_hidden = layers
    k1, k2, k3, k4 = jax.random.split(key, 4)
    bound_e = 1.0 / jnp.sqrt(d_in)
    bound_d = 1.0 / jnp.sqrt(d_hidden)
    w_enc = jax.random.uniform(k1, (d_hidden, d_in), jnp.float32, -bound_e, bound_e)
    b_enc = jax.random.uniform(k2, (d_hidden,), jnp.float32, -bound_e, bound_e)
    w_dec = jax.random.uniform(k3, (d_in, d_hidden), jnp.float32, -bound_d, bound_d)
    b_dec = jax.random.uniform(k4, (d_in,), jnp.float32, -bound_d, bound_d)
    return w_enc, b_enc, w_dec, b_dec


if __name__ == "__main__":
    # Small shapes consistent with the module defaults: layers=[28*28, 30],
    # input (B, C, H, W) with C*H*W == 784. At this toy size the kernel is
    # pure launch/DMA overhead; the tiling only pays off at large B.
    B, C, H, W = 2, 1, 28, 28
    D = C * H * W
    HIDDEN = 30

    key = jax.random.PRNGKey(0)
    kx, kp = jax.random.split(key)
    x = jax.random.normal(kx, (B, C, H, W), dtype=jnp.float32)
    w_enc, b_enc, w_dec, b_dec = init_params(kp, layers=(D, HIDDEN))

    # Weight prep hoisted out of the forward call (bf16 MXU operands).
    params = prepare_params(w_enc, b_enc, w_dec, b_dec, use_bf16=True)

    out = autoencoder_forward(x, params)
    out = jax.block_until_ready(out)

    # Reference check in plain JAX (f32 math). bf16 MXU operands -> ~1e-2 tol.
    x2d = x.reshape(B, D)
    h_ref = x2d @ w_enc.T + b_enc
    y_ref = jax.nn.sigmoid(h_ref @ w_dec.T + b_dec).reshape(B, C, H, W)
    assert out.shape == (B, C, H, W)
    assert jnp.allclose(out, y_ref, atol=2e-2, rtol=2e-2), (
        float(jnp.max(jnp.abs(out - y_ref))))

    print("KERNEL_OK")
</pallas_src>

<mosaic_0001>
module attributes {stable_mosaic.version = 11 : i64} {
  func.func @_ae_kernel(%arg0: i32, %arg1: memref<2x784xf32, #tpu.memory_space<vmem>>, %arg2: memref<784x30xbf16, #tpu.memory_space<vmem>>, %arg3: memref<1x30xf32, #tpu.memory_space<vmem>>, %arg4: memref<30x784xbf16, #tpu.memory_space<vmem>>, %arg5: memref<1x784xf32, #tpu.memory_space<vmem>>, %arg6: memref<2x784xf32, #tpu.memory_space<vmem>>) attributes {dimension_semantics = [#tpu.dimension_semantics<parallel>], iteration_bounds = array<i64: 1>, scalar_prefetch = 0 : i64, scratch_operands = 0 : i64, tpu.core_type = #tpu.core_type<tc>, window_params = [{transform_indices = @transform_0, window_bounds = array<i64: 2, 784>}, {pipeline_mode = #tpu.pipeline_mode<synchronous>, transform_indices = @transform_1, window_bounds = array<i64: 784, 30>}, {pipeline_mode = #tpu.pipeline_mode<synchronous>, transform_indices = @transform_2, window_bounds = array<i64: 1, 30>}, {pipeline_mode = #tpu.pipeline_mode<synchronous>, transform_indices = @transform_3, window_bounds = array<i64: 30, 784>}, {pipeline_mode = #tpu.pipeline_mode<synchronous>, transform_indices = @transform_4, window_bounds = array<i64: 1, 784>}, {transform_indices = @transform_5, window_bounds = array<i64: 2, 784>}]} {
    %c0 = arith.constant 0 : index
    %c0_0 = arith.constant 0 : index
    %0 = vector.load %arg1[%c0, %c0_0] : memref<2x784xf32, #tpu.memory_space<vmem>>, vector<2x784xf32>
    %1 = arith.truncf %0 : vector<2x784xf32> to vector<2x784xbf16>
    %c0_1 = arith.constant 0 : index
    %c0_2 = arith.constant 0 : index
    %2 = vector.load %arg2[%c0_1, %c0_2] : memref<784x30xbf16, #tpu.memory_space<vmem>>, vector<784x30xbf16>
    %cst = arith.constant dense<0.000000e+00> : vector<2x30xf32>
    %3 = tpu.matmul %1, %2, %cst {dimension_numbers = #tpu.dot_dimension_numbers<[1], [0], [0], [1], [0, 0, 1, 1], [], []>} : vector<2x784xbf16>, vector<784x30xbf16>, vector<2x30xf32> -> vector<2x30xf32>
    %c0_3 = arith.constant 0 : index
    %c0_4 = arith.constant 0 : index
    %4 = vector.load %arg3[%c0_3, %c0_4] : memref<1x30xf32, #tpu.memory_space<vmem>>, vector<1x30xf32>
    %5 = vector.broadcast %4 : vector<1x30xf32> to vector<2x30xf32>
    %6 = arith.addf %3, %5 : vector<2x30xf32>
    %7 = arith.truncf %6 : vector<2x30xf32> to vector<2x30xbf16>
    %c0_5 = arith.constant 0 : index
    %c0_6 = arith.constant 0 : index
    %8 = vector.load %arg4[%c0_5, %c0_6] : memref<30x784xbf16, #tpu.memory_space<vmem>>, vector<30x784xbf16>
    %cst_7 = arith.constant dense<0.000000e+00> : vector<2x784xf32>
    %9 = tpu.matmul %7, %8, %cst_7 {dimension_numbers = #tpu.dot_dimension_numbers<[1], [0], [0], [1], [0, 0, 1, 1], [], []>} : vector<2x30xbf16>, vector<30x784xbf16>, vector<2x784xf32> -> vector<2x784xf32>
    %c0_8 = arith.constant 0 : index
    %c0_9 = arith.constant 0 : index
    %10 = vector.load %arg5[%c0_8, %c0_9] : memref<1x784xf32, #tpu.memory_space<vmem>>, vector<1x784xf32>
    %11 = vector.broadcast %10 : vector<1x784xf32> to vector<2x784xf32>
    %12 = arith.addf %9, %11 : vector<2x784xf32>
    %cst_10 = arith.constant 0.000000e+00 : f32
    %13 = vector.broadcast %cst_10 : f32 to vector<2x784xf32>
    %14 = arith.subf %13, %12 : vector<2x784xf32>
    %15 = math.exp %14 : vector<2x784xf32>
    %cst_11 = arith.constant 1.000000e+00 : f32
    %16 = vector.broadcast %cst_11 : f32 to vector<2x784xf32>
    %17 = arith.addf %16, %15 : vector<2x784xf32>
    %18 = tpu.reciprocal %17 {approx = true} : vector<2x784xf32> -> vector<2x784xf32>
    %c0_12 = arith.constant 0 : index
    %c0_13 = arith.constant 0 : index
    %19 = vector.load %arg6[%c0_12, %c0_13] : memref<2x784xf32, #tpu.memory_space<vmem>>, vector<2x784xf32>
    tpu.vector_store %arg6[%c0_12, %c0_13], %18 {strides = array<i32>} : memref<2x784xf32, #tpu.memory_space<vmem>>, vector<2x784xf32>,
    return
  }
  func.func @transform_0(%arg0: i32) -> (i32, i32) {
    %c0_i32 = arith.constant 0 : i32
    %c0_i32_0 = arith.constant 0 : i32
    return %arg0, %c0_i32 : i32, i32
  }
  func.func @transform_1(%arg0: i32) -> (i32, i32) {
    %c0_i32 = arith.constant 0 : i32
    %c0_i32_0 = arith.constant 0 : i32
    %c0_i32_1 = arith.constant 0 : i32
    return %c0_i32, %c0_i32_0 : i32, i32
  }
  func.func @transform_2(%arg0: i32) -> (i32, i32) {
    %c0_i32 = arith.constant 0 : i32
    %c0_i32_0 = arith.constant 0 : i32
    %c0_i32_1 = arith.constant 0 : i32
    return %c0_i32, %c0_i32_0 : i32, i32
  }
  func.func @transform_3(%arg0: i32) -> (i32, i32) {
    %c0_i32 = arith.constant 0 : i32
    %c0_i32_0 = arith.constant 0 : i32
    %c0_i32_1 = arith.constant 0 : i32
    return %c0_i32, %c0_i32_0 : i32, i32
  }
  func.func @transform_4(%arg0: i32) -> (i32, i32) {
    %c0_i32 = arith.constant 0 : i32
    %c0_i32_0 = arith.constant 0 : i32
    %c0_i32_1 = arith.constant 0 : i32
    return %c0_i32, %c0_i32_0 : i32, i32
  }
  func.func @transform_5(%arg0: i32) -> (i32, i32) {
    %c0_i32 = arith.constant 0 : i32
    %c0_i32_0 = arith.constant 0 : i32
    return %arg0, %c0_i32 : i32, i32
  }
}

</mosaic_0001>

<bundles_post_ra>
// kernel: tpu_custom_call.1
= control target key start
LH: loop header
LB: loop body
LE: loop exit
PB: predicated region body
PF: predicated region fallthrough
CT: control target
= control target key end

     0   :  { %s1510_s0 = inlined_call_operand.vmem [shape: f32[2,784], index: 0, kind: input, shape index: {}]   ;;  %s1511_s1 = inlined_call_operand.vmem [shape: bf16[784,30], index: 1, kind: input, shape index: {}]   ;;  %s1512_s2 = inlined_call_operand.vmem [shape: f32[1,30], index: 2, kind: input, shape index: {}]   ;;  %s1513_s3 = inlined_call_operand.vmem [shape: bf16[30,784], index: 3, kind: input, shape index: {}]   ;;  %s1514_s4 = inlined_call_operand.vmem [shape: f32[1,784], index: 4, kind: input, shape index: {}]   ;;  %s1515_s5 = inlined_call_operand.hbm [shape: f32[2,784], index: 5, kind: output, shape index: {}]  }
   0x1   :  { %v1102_v0 = vld [vmem:[%s1511_s1 + $0x38] sm:$0xff]  ;;  %v1101_v3 = vld [vmem:[%s1511_s1 + $0x30] sm:$0xff]  ;;  %v1100_v8 = vld [vmem:[%s1511_s1 + $0x28] sm:$0xff] }
   0x2   :  { %v1110_v1 = vld [vmem:[%s1511_s1 + $0x78] sm:$0xff]  ;;  %450 = vmatpush.bf16.msra.mxu0 %v1102_v0  ;;  %v1109_v4 = vld [vmem:[%s1511_s1 + $0x70] sm:$0xff]  ;;  %v1108_v9 = vld [vmem:[%s1511_s1 + $0x68] sm:$0xff] }
   0x3   :  { %v1118_v2 = vld [vmem:[%s1511_s1 + $0xb8] sm:$0xff]  ;;  %463 = vmatpush.bf16.msra.mxu1 %v1110_v1  ;;  %v1117_v5 = vld [vmem:[%s1511_s1 + $0xb0] sm:$0xff]  ;;  %v1116_v10 = vld [vmem:[%s1511_s1 + $0xa8] sm:$0xff] }
   0x4   :  { %476 = vmatpush.bf16.msra.mxu2 %v1118_v2  ;;  %v1126_v6 = vld [vmem:[%s1511_s1 + $0xf8] sm:$0xff]  ;;  %v1125_v7 = vld [vmem:[%s1511_s1 + $0xf0] sm:$0xff]  ;;  %v1124_v11 = vld [vmem:[%s1511_s1 + $0xe8] sm:$0xff] }
   0x5   :  { %489 = vmatpush.bf16.msra.mxu3 %v1126_v6  ;;  %v1099_v12 = vld [vmem:[%s1511_s1 + $0x20] sm:$0xff]  ;;  %v1098_v17 = vld [vmem:[%s1511_s1 + $0x18] sm:$0xff]  ;;  %v23_v19 = vld [vmem:[%s1510_s0 + $0x8] sm:$0x3f] }
   0x6   :  { %451 = vmatpush.bf16.msra.mxu0 %v1101_v3  ;;  %v1107_v13 = vld [vmem:[%s1511_s1 + $0x60] sm:$0xff]  ;;  %v1106_v18 = vld [vmem:[%s1511_s1 + $0x58] sm:$0xff]  ;;  %28 = vst [vmem:[#allocation1 + $0x20] ss:$4 sm:$0xff] %v23_v19 }
   0x7   :  { %464 = vmatpush.bf16.msra.mxu1 %v1109_v4  ;;  %v1115_v14 = vld [vmem:[%s1511_s1 + $0xa0] sm:$0xff]  ;;  %v1114_v20 = vld [vmem:[%s1511_s1 + $0x98] sm:$0xff] }
   0x8   :  { %477 = vmatpush.bf16.msra.mxu2 %v1117_v5  ;;  %v22_v15 = vld [vmem:[%s1510_s0] sm:$0xff] }
   0x9   :  { %490 = vmatpush.bf16.msra.mxu3 %v1125_v7  ;;  %26 = vst [vmem:[#allocation1] ss:$4 sm:$0xff] %v22_v15  ;;  %v1123_v16 = vld [vmem:[%s1511_s1 + $0xe0] sm:$0xff] }
   0xa   :  { %452 = vmatpush.bf16.msra.mxu0 %v1100_v8 }
   0xb   :  { %465 = vmatpush.bf16.msra.mxu1 %v1108_v9 }
   0xc   :  { %478 = vmatpush.bf16.msra.mxu2 %v1116_v10 }
   0xd   :  { %491 = vmatpush.bf16.msra.mxu3 %v1124_v11 }
   0xe   :  { %453 = vmatpush.bf16.msra.mxu0 %v1099_v12 }
   0xf   :  { %466 = vmatpush.bf16.msra.mxu1 %v1107_v13 }
  0x10   :  { %479 = vmatpush.bf16.msra.mxu2 %v1115_v14 }
  0x11   :  { %10 = vsyncpa [#allocation3], 0  ;;  %492 = vmatpush.bf16.msra.mxu3 %v1123_v16  ;;  %v1122_v21 = vld [vmem:[%s1511_s1 + $0xd8] sm:$0xff]  ;;  %v1097_v22 = vld [vmem:[%s1511_s1 + $0x10] sm:$0xff]  ;;  %vm446_vm0 = vcmask 130048   ;;  %vm643_vm1 = vcmask 1046528  }
  0x12   :  { %454 = vmatpush.bf16.msra.mxu0 %v1098_v17  ;;  %v1105_v23 = vld [vmem:[%s1511_s1 + $0x50] sm:$0xff]  ;;  %v1096_v26 = vld [vmem:[%s1511_s1 + $0x8] sm:$0xff]  ;;  %v1095_v29 = vld [vmem:[%s1511_s1] sm:$0xff]  ;;  %vm639_vm2 = vcmask 244736   ;;  %vm803_vm3 = vcmask 1041408   ;;  %vm805_vm4 = vcmask 1045508  }
  0x13   :  { %467 = vmatpush.bf16.msra.mxu1 %v1106_v18  ;;  %v1113_v24 = vld [vmem:[%s1511_s1 + $0x90] sm:$0xff]  ;;  %v1104_v27 = vld [vmem:[%s1511_s1 + $0x48] sm:$0xff]  ;;  %v1103_v30 = vld [vmem:[%s1511_s1 + $0x40] sm:$0xff]  ;;  %vm807_vm5 = vcmask 1043456   ;;  %vm814_vm6 = vcmask 1043458   ;;  %vm816_vm8 = vcmask 128004  }
  0x14   :  { %480 = vmatpush.bf16.msra.mxu2 %v1114_v20  ;;  %v1121_v25 = vld [vmem:[%s1511_s1 + $0xd0] sm:$0xff]  ;;  %v1112_v28 = vld [vmem:[%s1511_s1 + $0x88] sm:$0xff]  ;;  %v29_v32 = vld.sshfl [vmem:[#allocation1] sm:$0xff pattern:$0x73625140]  ;;  %s826_s23 = sshll.u32 %s1515_s5, 4  ;;  %s827_s23 = int_to_ptr.hbm [resolvable:$true] %s826_s23 }
  0x15   :  { %493 = vmatpush.bf16.msra.mxu3 %v1122_v21  ;;  %v1120_v31 = vld [vmem:[%s1511_s1 + $0xc8] sm:$0xff]  ;;  %v1134_v34 = vld [vmem:[%s1511_s1 + $0x138] sm:$0xff]  ;;  %v1111_v36 = vld [vmem:[%s1511_s1 + $0x80] sm:$0xff]  ;;  %v43_v38 = vpack.c.bf16 %v29_v32, %v29_v32 }
  0x16   :  { %455 = vmatpush.bf16.msra.mxu0 %v1097_v22  ;;  %v30_v33 = vld.sshfl [vmem:[#allocation1 + $0x8] sm:$0xff pattern:$0x73625140]  ;;  %v1142_v35 = vld [vmem:[%s1511_s1 + $0x178] sm:$0xff]  ;;  %v1119_v40 = vld [vmem:[%s1511_s1 + $0xc0] sm:$0xff] }
  0x17   :  { %468 = vmatpush.bf16.msra.mxu1 %v1105_v23  ;;  %v31_v37 = vld.sshfl [vmem:[#allocation1 + $0x10] sm:$0xff pattern:$0x73625140]  ;;  %v44_v39 = vpack.c.bf16 %v30_v33, %v30_v33  ;;  %v1143_v41 = vld [vmem:[%s1511_s1 + $0x180] sm:$0xff]  ;;  %v1132_v47 = vld [vmem:[%s1511_s1 + $0x128] sm:$0xff] }
  0x18   :  { %481 = vmatpush.bf16.msra.mxu2 %v1113_v24  ;;  %v32_v42 = vld.sshfl [vmem:[#allocation1 + $0x18] sm:$0xff pattern:$0x73625140]  ;;  %v1133_v43 = vld [vmem:[%s1511_s1 + $0x130] sm:$0xff]  ;;  %v45_v45 = vpack.c.bf16 %v31_v37, %v31_v37  ;;  %v1140_v48 = vld [vmem:[%s1511_s1 + $0x168] sm:$0xff] }
  0x19   :  { %494 = vmatpush.bf16.msra.mxu3 %v1121_v25  ;;  %v1141_v44 = vld [vmem:[%s1511_s1 + $0x170] sm:$0xff]  ;;  %v46_v46 = vpack.c.bf16 %v32_v42, %v32_v42  ;;  %v1131_v49 = vld [vmem:[%s1511_s1 + $0x120] sm:$0xff]  ;;  %v1130_v51 = vld [vmem:[%s1511_s1 + $0x118] sm:$0xff] }
  0x1a   :  { %456 = vmatpush.bf16.msra.mxu0 %v1096_v26  ;;  %v1139_v50 = vld [vmem:[%s1511_s1 + $0x160] sm:$0xff]  ;;  %v1138_v52 = vld [vmem:[%s1511_s1 + $0x158] sm:$0xff]  ;;  %v35_v53 = vld.sshfl [vmem:[#allocation1 + $0x30] sm:$0xff pattern:$0x73625140] }
  0x1b   :  { %469 = vmatpush.bf16.msra.mxu1 %v1104_v27  ;;  %v1129_v54 = vld [vmem:[%s1511_s1 + $0x110] sm:$0xff]  ;;  %v49_v56 = vpack.c.bf16 %v35_v53, %v35_v53  ;;  %v1128_v57 = vld [vmem:[%s1511_s1 + $0x108] sm:$0xff]  ;;  %v1127_v59 = vld [vmem:[%s1511_s1 + $0x100] sm:$0xff] }
  0x1c   :  { %482 = vmatpush.bf16.msra.mxu2 %v1112_v28  ;;  %v1137_v55 = vld [vmem:[%s1511_s1 + $0x150] sm:$0xff]  ;;  %v1136_v58 = vld [vmem:[%s1511_s1 + $0x148] sm:$0xff]  ;;  %v1135_v60 = vld [vmem:[%s1511_s1 + $0x140] sm:$0xff] }
  0x1d   :  { %495 = vmatpush.bf16.msra.mxu3 %v1120_v31  ;;  %v33_v61 = vld.sshfl [vmem:[#allocation1 + $0x20] sm:$0xff pattern:$0x73625140]  ;;  %v34_v62 = vld.sshfl [vmem:[#allocation1 + $0x28] sm:$0xff pattern:$0x73625140]  ;;  %vm815_vm7 = vmor %vm814_vm6, %vm803_vm3 }
  0x1e   :  { %457 = vmatpush.bf16.msra.mxu0 %v1095_v29  ;;  %v47_v63 = vpack.c.bf16 %v33_v61, %v33_v61  ;;  %v48_v0 = vpack.c.bf16 %v34_v62, %v34_v62  ;;  %v1062_v1 = vld [vmem:[%s1513_s3 + $0x38] sm:$0xf]  ;;  %v1154_v2 = vld [vmem:[%s1513_s3 + $0x50] sm:$0x70]  ;;  %v1151_v5 = vld [vmem:[%s1513_s3 + $0x3c] sm:$0xf] }
  0x1f   :  { %470 = vmatpush.bf16.msra.mxu1 %v1103_v30  ;;  %v1063_v3 = vor.u32 %v1154_v2, %v1062_v1  ;;  %v1064_v6 = vld [vmem:[%s1513_s3 + $0x54] sm:$0x70]  ;;  %v1152_v7 = vld [vmem:[%s1513_s3 + $0x44] sm:$0xf]  ;;  %v1072_v9 = vld [vmem:[%s1513_s3 + $0x5c] sm:$0x70] }
  0x20   :  { %483 = vmatpush.bf16.msra.mxu2 %v1111_v36  ;;  %v1067_v8 = vor.u32 %v1151_v5, %v1064_v6  ;;  %v1078_v10 = vld [vmem:[%s1513_s3 + $0x48] sm:$0xf]  ;;  %v1156_v11 = vld [vmem:[%s1513_s3 + $0x60] sm:$0x70]  ;;  %v1075_v12 = vor.u32 %v1152_v7, %v1072_v9  ;;  %v1034_v19 = vld [vmem:[%s1513_s3] sm:$0xf] }
  0x21   :  { %458 = vmatmul.bf16.vlgmr.msra.gmra.mxu0 %v43_v38  ;;  %496 = vmatpush.bf16.msra.mxu3 %v1119_v40  ;;  %v645_v4 = vsel %vm643_vm1, %v1063_v3, 0  ;;  %v1079_v13 = vor.u32 %v1156_v11, %v1078_v10  ;;  %v1147_v20 = vld [vmem:[%s1513_s3 + $0x18] sm:$0xf0]  ;;  %v1144_v21 = vld [vmem:[%s1513_s3 + $0x4] sm:$0xf]  ;;  %vm817_vm9 = vmor %vm816_vm8, %vm815_vm7 }
  0x22   :  { %502 = vmatpush.bf16.msrb.mxu0 %v1134_v34  ;;  %471 = vmatmul.bf16.vlgmr.msra.gmra.mxu1 %v44_v39  ;;  %v648_v14 = vsel %vm643_vm1, %v1067_v8, 0  ;;  %v654_v15 = vsel %vm643_vm1, %v1075_v12, 0  ;;  %v1035_v22 = vor.u32 %v1147_v20, %v1034_v19  ;;  %v1036_v23 = vld [vmem:[%s1513_s3 + $0x1c] sm:$0xf0]  ;;  %v1145_v24 = vld [vmem:[%s1513_s3 + $0xc] sm:$0xf] }
  0x23   :  { %515 = vmatpush.bf16.msrb.mxu1 %v1142_v35  ;;  %484 = vmatmul.bf16.vlgmr.msra.gmra.mxu2 %v45_v45  ;;  %v657_v16 = vsel %vm643_vm1, %v1079_v13, 0  ;;  %v1044_v25 = vld [vmem:[%s1513_s3 + $0x24] sm:$0xf0]  ;;  %v1039_v26 = vor.u32 %v1144_v21, %v1036_v23  ;;  %v1050_v28 = vld [vmem:[%s1513_s3 + $0x10] sm:$0xf] }
  0x24   :  { %535 = vmatpush.bf16.msrb.mxu2 %v1143_v41  ;;  %497 = vmatmul.bf16.vlgmr.msra.gmra.mxu3 %v46_v46  ;;  %v1047_v27 = vor.u32 %v1145_v24, %v1044_v25  ;;  %v1149_v29 = vld [vmem:[%s1513_s3 + $0x28] sm:$0xf0]  ;;  %v1070_v31 = vld [vmem:[%s1513_s3 + $0x40] sm:$0xf]  ;;  %v1155_v32 = vld [vmem:[%s1513_s3 + $0x58] sm:$0x70] }
  0x25   :  { %671 = vmatpush.bf16.msrb.mxu3 %v645_v4  ;;  %v1051_v30 = vor.u32 %v1149_v29, %v1050_v28  ;;  %v1071_v33 = vor.u32 %v1155_v32, %v1070_v31  ;;  %v1042_v34 = vld [vmem:[%s1513_s3 + $0x8] sm:$0xf]  ;;  %v1148_v35 = vld [vmem:[%s1513_s3 + $0x20] sm:$0xf0]  ;;  %v1153_v36 = vld [vmem:[%s1513_s3 + $0x4c] sm:$0xf] }
  0x26   :  { %503 = vmatpush.bf16.msrb.mxu0 %v1133_v43  ;;  %v1080_v39 = vld [vmem:[%s1513_s3 + $0x64] sm:$0x70]  ;;  %v1146_v43 = vld [vmem:[%s1513_s3 + $0x14] sm:$0xf]  ;;  %v1043_v46 = vor.u32 %v1148_v35, %v1042_v34  ;;  %v1157_v61 = vld [vmem:[%s1513_s3 + $0x68] sm:$0x70] }
  0x27   :  { %516 = vmatpush.bf16.msrb.mxu1 %v1141_v44  ;;  %v651_v41 = vsel %vm643_vm1, %v1071_v33, 0  ;;  %v1083_v42 = vor.u32 %v1153_v36, %v1080_v39  ;;  %v1052_v44 = vld [vmem:[%s1513_s3 + $0x2c] sm:$0xf0]  ;;  %v1058_v6 = vld [vmem:[%s1513_s3 + $0x18] sm:$0xf] }
  0x28   :  { %684 = vmatpush.bf16.msra.mxu2 %v648_v14  ;;  %v1150_v7 = vld [vmem:[%s1513_s3 + $0x30] sm:$0xf0]  ;;  %v558_v11 = vld [vmem:[%s1514_s4] sm:$0x7f]  ;;  %s1214_s4 = smov [#allocation2]  }
  0x29   :  { %672 = vmatpush.bf16.msrb.mxu3 %v1035_v22  ;;  %v1059_v8 = vor.u32 %v1150_v7, %v1058_v6  ;;  %v561_v12 = vperm.slane %v558_v11, 1  ;;  %v563_v13 = vperm.slane %v558_v11, 3  ;;  %v560_v20 = vperm.slane %v558_v11, 0  ;;  %s824_s1 = sshll.u32 %s1214_s4, 4  ;;  %s825_s1 = int_to_ptr.vmem [resolvable:$true] %s824_s1 }
  0x2a   :  { %504 = vmatpush.bf16.msrb.mxu0 %v1132_v47  ;;  %v660_v47 = vsel %vm643_vm1, %v1083_v42, 0  ;;  %v562_v29 = vperm.slane %v558_v11, 2 }
  0x2b   :  { %517 = vmatpush.bf16.msrb.mxu1 %v1140_v48  ;;  %v1159_v48 = vld [vmem:[%s1512_s2] ss:$0 sm:$0xff] }
  0x2c   :  { %685 = vmatpush.bf16.msra.mxu2 %v1039_v26 }
  0x2d   :  { %697 = vmatpush.bf16.msra.mxu3 %v651_v41 }
  0x2e   :  { %505 = vmatpush.bf16.msrb.mxu0 %v1131_v49  ;;  %v1055_v49 = vor.u32 %v1146_v43, %v1052_v44 }
  0x2f   :  { %518 = vmatpush.bf16.msrb.mxu1 %v1139_v50 }
  0x31   :  { %698 = vmatpush.bf16.msra.mxu3 %v1043_v46 }
  0x32   :  { %506 = vmatpush.bf16.msrb.mxu0 %v1130_v51 }
  0x33   :  { %519 = vmatpush.bf16.msrb.mxu1 %v1138_v52  ;;  %1031 = vmatmul.msk.bf16.vlgmr.msrb.gmra.mxu2 %vm446_vm0, %v49_v56 }
  0x34   :  { %736 = vmatpush.bf16.msrb.mxu2 %v660_v47 }
  0x36   :  { %507 = vmatpush.bf16.msrb.mxu0 %v1129_v54 }
  0x37   :  { %520 = vmatpush.bf16.msrb.mxu1 %v1137_v55 }
  0x38   :  { %737 = vmatpush.bf16.msrb.mxu2 %v1055_v49 }
  0x3a   :  { %508 = vmatpush.bf16.msrb.mxu0 %v1128_v57 }
  0x3b   :  { %521 = vmatpush.bf16.msrb.mxu1 %v1136_v58 }
  0x3e   :  { %509 = vmatpush.bf16.msrb.mxu0 %v1127_v59 }
  0x3f   :  { %522 = vmatpush.bf16.msrb.mxu1 %v1135_v60  ;;  %v1086_v60 = vld [vmem:[%s1513_s3 + $0x50] sm:$0xf] }
  0x41   :  { %510 = vmatmul.bf16.vlgmr.msrb.gmra.mxu0 %v47_v63 }
  0x42   :  { %523 = vmatmul.bf16.vlgmr.msrb.gmra.mxu1 %v48_v0  ;;  %710 = vmatpush.bf16.msra.mxu0 %v654_v15  ;;  %v1087_v0 = vor.u32 %v1157_v61, %v1086_v60 }
  0x43   :  { %723 = vmatpush.bf16.msra.mxu1 %v657_v16 }
  0x44   :  { %v663_v5 = vsel %vm643_vm1, %v1087_v0, 0 }
  0x46   :  { %711 = vmatpush.bf16.msra.mxu0 %v1047_v27 }
  0x47   :  { %724 = vmatpush.bf16.msra.mxu1 %v1051_v30  ;;  %v565_v30 = vperm.slane %v558_v11, 5 }
  0x9e   :  { %v459_v17 = vpop.f32.mrf.mxu0 }
  0x9f   :  { %v472_v18 = vpop.f32.mrf.mxu1  ;;  %v460_v50 = vadd.f32 %v1159_v48, %v459_v17 }
  0xa1   :  { %v473_v53 = vadd.f32 %v472_v18, %v460_v50 }
  0xa6   :  { %v461_v37 = vpop.f32.mrf.mxu0  ;;  %v485_v40 = vpop.f32.mrf.mxu2 }
  0xa7   :  { %v474_v38 = vpop.f32.mrf.mxu1  ;;  %v498_v45 = vpop.f32.mrf.mxu3  ;;  %v486_v54 = vadd.f32 %v485_v40, %v473_v53  ;;  %v564_v37 = vperm.slane %v558_v11, 4 }
  0xa9   :  { %v499_v56 = vadd.f32 %v498_v45, %v486_v54 }
  0xae   :  { %v487_v51 = vpop.f32.mrf.mxu2 }
  0xaf   :  { %v500_v52 = vpop.f32.mrf.mxu3  ;;  %v566_v51 = vperm.slane %v558_v11, 6 }
  0xb6   :  { %v537_v55 = vpop.f32.mrf.mxu2 }
  0xbe   :  { %v511_v57 = vpop.f32.mrf.mxu0  ;;  %v539_v63 = vpop.f32.mrf.mxu2 }
  0xbf   :  { %v524_v58 = vpop.f32.mrf.mxu1  ;;  %v512_v59 = vadd.f32 %v511_v57, %v499_v56 }
  0xc1   :  { %v525_v62 = vadd.f32 %v524_v58, %v512_v59 }
  0xc3   :  { %v538_v1 = vadd.f32 %v537_v55, %v525_v62 }
  0xc5   :  { %v541_v2 = vpack.c.bf16 %v538_v1, %v538_v1 }
  0xc6   :  { %v513_v3 = vpop.f32.mrf.mxu0 }
  0xc7   :  { %v526_v4 = vpop.f32.mrf.mxu1  ;;  %1088 = vmatmul.msk.bf16.vlgmr.msrb.gmra.mxu3 %vm639_vm2, %v541_v2  ;;  %1089 = vmatmul.msk.bf16.vlgmr.msra.gmra.mxu2 %vm639_vm2, %v541_v2 }
  0xc8   :  { %1091 = vmatmul.msk.bf16.vlgmr.msra.gmra.mxu0 %vm639_vm2, %v541_v2  ;;  %1092 = vmatmul.msk.bf16.vlgmr.msra.gmra.mxu1 %vm639_vm2, %v541_v2 }
  0xc9   :  { %749 = vmatpush.bf16.msrb.mxu3 %v663_v5 }
  0xcd   :  { %750 = vmatpush.bf16.msrb.mxu3 %v1059_v8 }
  0xd7   :  { %1090 = vmatmul.msk.bf16.vlgmr.msra.gmra.mxu3 %vm639_vm2, %v541_v2  ;;  %1093 = vmatmul.msk.bf16.vlgmr.msrb.gmra.mxu2 %vm639_vm2, %v541_v2 }
  0xe7   :  { %1094 = vmatmul.msk.bf16.vlgmr.msrb.gmra.mxu3 %vm639_vm2, %v541_v2 }
 0x145   :  { %v713_v9 = vpop.f32.mrf.mxu0  ;;  %v726_v10 = vpop.f32.mrf.mxu1 }
 0x146   :  { %v714_v19 = vadd.f32 %v713_v9, %v563_v13  ;;  %v727_v42 = vadd.f32 %v726_v10, %v564_v37 }
 0x148   :  { %v759_v22 = vsub.f32 0.0, %v714_v19  ;;  %v760_v49 = vsub.f32 0.0, %v727_v42 }
 0x14a   :  { %v674_v14 = vpop.f32.mrf.mxu3  ;;  %v687_v15 = vpop.f32.mrf.mxu2  ;;  %v769_v27 = vmul.f32 1.442695, %v759_v22  ;;  %v771_v54 = vmul.f32 1.442695, %v760_v49 }
 0x14b   :  { %v688_v16 = vadd.f32 %v687_v15, %v561_v12  ;;  %v675_v25 = vadd.f32 %v674_v14, %v560_v20 }
 0x14d   :  { %v715_v17 = vpop.f32.mrf.mxu0  ;;  %v728_v18 = vpop.f32.mrf.mxu1  ;;  %v757_v21 = vsub.f32 0.0, %v688_v16  ;;  %v756_v28 = vsub.f32 0.0, %v675_v25 }
 0x14f   :  { %v765_v26 = vmul.f32 1.442695, %v757_v21  ;;  %v763_v33 = vmul.f32 1.442695, %v756_v28 }
 0x151   :  { %1160 = vpow2.f32 %v765_v26 }
 0x152   :  { %v676_v23 = vpop.f32.mrf.mxu3  ;;  %v689_v24 = vpop.f32.mrf.mxu2  ;;  %1162 = vpow2.f32 %v769_v27 }
 0x153   :  { %1164 = vpow2.f32 %v763_v33 }
 0x157   :  { %v1161_v38 = vpop.eup %1160 }
 0x158   :  { %v1163_v40 = vpop.eup %1162  ;;  %v778_v43 = vadd.f32 1.0, %v1161_v38 }
 0x159   :  { %v780_v46 = vadd.f32 1.0, %v1163_v40  ;;  %v1165_v48 = vpop.eup %1164 }
 0x15a   :  { %v700_v31 = vpop.f32.mrf.mxu3  ;;  %v739_v32 = vpop.f32.mrf.mxu2  ;;  %v777_v52 = vadd.f32 1.0, %v1165_v48 }
 0x15b   :  { %v701_v34 = vadd.f32 %v700_v31, %v562_v29  ;;  %v740_v35 = vadd.f32 %v739_v32, %v565_v30 }
 0x15d   :  { %v758_v36 = vsub.f32 0.0, %v701_v34  ;;  %v761_v41 = vsub.f32 0.0, %v740_v35 }
 0x15f   :  { %v767_v39 = vmul.f32 1.442695, %v758_v36  ;;  %v773_v47 = vmul.f32 1.442695, %v761_v41 }
 0x161   :  { %1166 = vpow2.f32 %v767_v39 }
 0x162   :  { %v702_v44 = vpop.f32.mrf.mxu3  ;;  %v741_v45 = vpop.f32.mrf.mxu2  ;;  %1168 = vrcp.f32 %v778_v43 }
 0x163   :  { %1170 = vrcp.f32 %v780_v46 }
 0x164   :  { %1172 = vpow2.f32 %v773_v47 }
 0x167   :  { %v1167_v50 = vpop.eup %1166 }
 0x168   :  { %v779_v53 = vadd.f32 1.0, %v1167_v50  ;;  %v1169_v57 = vpop.eup %1168 }
 0x169   :  { %v1171_v58 = vpop.eup %1170  ;;  %v798_v61 = vrot.slane %v1169_v57, 6 }
 0x16a   :  { %1174 = vrcp.f32 %v779_v53  ;;  %v752_v55 = vpop.f32.mrf.mxu3  ;;  %v1173_v60 = vpop.eup %1172  ;;  %v800_v0 = vrot.slane %v1171_v58, 2 }
 0x16b   :  { %v753_v56 = vadd.f32 %v752_v55, %v566_v51  ;;  %1176 = vrcp.f32 %v777_v52  ;;  %v782_v2 = vadd.f32 1.0, %v1173_v60 }
 0x16c   :  { %1178 = vpow2.f32 %v771_v54 }
 0x16d   :  { %v762_v59 = vsub.f32 0.0, %v753_v56 }
 0x16f   :  { %v775_v62 = vmul.f32 1.442695, %v762_v59 }
 0x170   :  { %v1175_v63 = vpop.eup %1174 }
 0x171   :  { %v799_v1 = vrot.slane %v1175_v63, 4  ;;  %1180 = vpow2.f32 %v775_v62  ;;  %v1177_v3 = vpop.eup %1176 }
 0x172   :  { %v754_v4 = vpop.f32.mrf.mxu3  ;;  %v804_v5 = vsel %vm803_vm3, %v1177_v3, %v798_v61  ;;  %v1179_v7 = vpop.eup %1178  ;;  %1182 = vrcp.f32 %v782_v2 }
 0x173   :  { %v806_v6 = vsel %vm805_vm4, %v799_v1, %v800_v0  ;;  %v781_v10 = vadd.f32 1.0, %v1179_v7 }
 0x174   :  { %v808_v8 = vsel %vm807_vm5, %v804_v5, %v806_v6 }
 0x175   :  { %813 = vst [vmem:[#allocation2] sm:$0xff] %v808_v8 }
 0x177   :  { %v1181_v9 = vpop.eup %1180 }
 0x178   :  { %v783_v11 = vadd.f32 1.0, %v1181_v9  ;;  %v1183_v12 = vpop.eup %1182 }
 0x179   :  { %v801_v13 = vrot.slane %v1183_v12, 6 }
 0x17a   :  { %1184 = vrcp.f32 %v783_v11 }
 0x17b   :  { %1186 = vrcp.f32 %v781_v10 }
 0x180   :  { %v1185_v14 = vpop.eup %1184 }
 0x181   :  { %v1187_v15 = vpop.eup %1186  ;;  %v802_v16 = vrot.slane %v1185_v14, 4 }
 0x182   :  { %v809_v17 = vsel %vm803_vm3, %v1187_v15, %v801_v13 }
 0x183   :  { %v810_v18 = vsel %vm807_vm5, %v809_v17, %v802_v16 }
 0x184   :  { %818 = vst.msk [vmem:[#allocation2 + $0x8] sm:$0x3f] %vm817_vm9, %v810_v18 }
 0x185   :  { %829 = dma.vmem_to_hbm [thread:$0]  %s825_s1, 224, %s827_s23, [#allocation3]  }
 0x186   :  { %1212 = dma.done.wait [#allocation3], 224  }
 0x187   :  { %1213 = vsyncadd [#allocation3], 4294967072 }
 0x188   :  { %834 = vsyncpa [#allocation3], 1 }

</bundles_post_ra>
